<compile_context>
chip_gen: v5e
topology: v5e:2x2
jax: 0.10.0
libtpu: 0.0.40
codegen_flags: <defaults>
</compile_context>

<pallas_src>
import jax
import jax.numpy as jnp
from jax.experimental import pallas as pl
from jax.experimental.pallas import tpu as pltpu


def _pick_tile(n, cap, mult):
    """Largest divisor of n that is a multiple of `mult` and <= cap.

    Falls back to n (full extent) when no such divisor exists; a full-extent
    block dim is always legal w.r.t. the (8, 128) layout constraint.
    """
    if n <= cap:
        return n
    t = (min(cap, n) // mult) * mult
    while t >= mult:
        if n % t == 0:
            return t
        t -= mult
    return n


def _gcn_kernel_adj_first(adj_ref, x_ref, w_ref, b_ref, out_ref, acc_ref):
    """out = (adj @ x) @ W + b, K-tiled over the node/contraction axis."""
    @pl.when(pl.program_id(2) == 0)
    def _():
        acc_ref[...] = jnp.zeros_like(acc_ref)

    acc_ref[...] += jnp.einsum(
        'bmn,bnc->bmc', adj_ref[...], x_ref[...],
        preferred_element_type=jnp.float32)

    @pl.when(pl.program_id(2) == pl.num_programs(2) - 1)
    def _():
        bt, tm, cin = acc_ref.shape
        # Cast the f32 accumulator to the matmul dtype so the weight matmul
        # stays on the fast (bf16) MXU path; no-op in exact-f32 mode.
        tmp = acc_ref[...].astype(w_ref.dtype)
        out = jnp.dot(tmp.reshape(bt * tm, cin), w_ref[...],
                      preferred_element_type=jnp.float32)
        out = out.reshape(bt, tm, -1) + b_ref[...]
        out_ref[...] = out.astype(out_ref.dtype)


def _gcn_kernel_hoisted(adj_ref, h_ref, b_ref, out_ref, acc_ref):
    """out = adj @ h + b where h = x @ W was precomputed outside the kernel."""
    @pl.when(pl.program_id(2) == 0)
    def _():
        acc_ref[...] = jnp.zeros_like(acc_ref)

    acc_ref[...] += jnp.einsum(
        'bmn,bnc->bmc', adj_ref[...], h_ref[...],
        preferred_element_type=jnp.float32)

    @pl.when(pl.program_id(2) == pl.num_programs(2) - 1)
    def _():
        out_ref[...] = (acc_ref[...] + b_ref[...]).astype(out_ref.dtype)


def graph_convolution(x, adj, weight, bias=None, *, block_m=None, block_k=None,
                      batch_block=None, matmul_dtype=jnp.bfloat16,
                      interpret=False):
    """out = adj @ x @ weight (+ bias).

    x: (B, N, Cin), adj: (B, N, N), weight: (Cin, Cout), bias: (Cout,) or None.
    matmul_dtype: dtype of the MXU matmul inputs (accumulation is always f32).
      Default bfloat16 (fast MXU path, halves adj/x HBM traffic); pass None
      for exact f32 module semantics.
    """
    B, N, Cin = x.shape
    Cin_w, Cout = weight.shape
    if Cin_w != Cin:
        raise ValueError(f"weight shape {weight.shape} does not match Cin={Cin}")
    if adj.shape != (B, N, N):
        raise ValueError(f"adj shape {adj.shape} does not match (B, N, N)")
    out_dtype = x.dtype

    md = matmul_dtype if matmul_dtype is not None else x.dtype
    in_isz = jnp.dtype(md).itemsize
    out_isz = jnp.dtype(out_dtype).itemsize

    # ---- generation-aware VMEM budget (v5e/v6e: 128 MiB, v7x: 64 MiB).
    try:
        phys = int(pltpu.get_tpu_info().vmem_capacity_bytes)
    except Exception:
        phys = 64 << 20                       # conservative fallback
    vmem_cap = max(32 << 20, phys - (16 << 20))   # leave Mosaic headroom

    if block_m is None:
        block_m = 512 if phys >= (96 << 20) else 256
    if block_k is None:
        block_k = 1024 if phys >= (96 << 20) else 512

    # ---- matmul-order selection: shrink the O(N^2) matmul width.
    hoist = Cout < Cin            # compute h = x @ W outside, kernel does adj @ h
    kwidth = Cout if hoist else Cin    # width of the second kernel operand
    acc_w = Cout if hoist else Cin     # accumulator width

    # ---- operands (bf16 MXU inputs by default, f32 accumulation everywhere).
    adj_in = adj.astype(md)
    b_arr = (jnp.zeros((1, Cout), out_dtype) if bias is None
             else bias.reshape(1, Cout).astype(out_dtype))
    if hoist:
        # Small XLA matmul (O(B*N*Cin*Cout) << O(B*N^2)); lets both spatial
        # grid axes stay "parallel" and removes the in-kernel x@W bubble.
        h = jnp.einsum('bnc,cd->bnd', x.astype(md), weight.astype(md),
                       preferred_element_type=jnp.float32)
        h_in = h.astype(md)   # one extra rounding of the intermediate in bf16 mode
    else:
        x_in = x.astype(md)
        w_in = weight.astype(md)

    # ---- tiling: pack small graphs along batch, row-tile + K-tile large ones.
    if N <= block_m:
        tm = N
        if batch_block is not None:
            bt = int(max(1, min(B, batch_block)))
        else:
            per_b = (2 * N * N * in_isz + 2 * N * kwidth * in_isz
                     + 2 * N * Cout * out_isz + N * acc_w * 4)
            bt = int(max(1, (vmem_cap // 2) // max(per_b, 1)))
            bt = min(bt, B, max(1, 1024 // max(N, 1)))
    else:
        tm = _pick_tile(N, block_m, 8)
        bt = int(max(1, min(B, batch_block))) if batch_block is not None else 1
    if tm % 8 != 0:
        bt = 1      # keep merged (bt*tm, C) matmuls sublane-aligned
    tk = _pick_tile(N, block_k, 128)   # contraction tile must divide N exactly

    def working_set(bt_, tm_, tk_):
        blk = 2 * bt_ * tm_ * tk_ * in_isz           # adj tiles (double-buffered)
        blk += 2 * bt_ * tk_ * kwidth * in_isz       # x / h tiles
        blk += 2 * bt_ * tm_ * Cout * out_isz        # out tiles
        blk += 2 * Cout * out_isz                    # bias (resident)
        blk += bt_ * tm_ * acc_w * 4                 # f32 accumulator scratch
        if not hoist:
            blk += 2 * Cin * Cout * in_isz           # resident weight
        return blk

    # ---- shrink tiles to the VMEM budget (instead of clamping the limit).
    budget = max(vmem_cap - (4 << 20), 16 << 20)
    for _ in range(64):
        if working_set(bt, tm, tk) <= budget:
            break
        if tk != N and tk > 128:
            new_tk = _pick_tile(N, tk - 128, 128)
            if new_tk < tk:
                tk = new_tk
                continue
        if tm != N and tm > 8:
            new_tm = _pick_tile(N, tm - 8, 8)
            if new_tm < tm:
                tm = new_tm
                continue
        if bt > 1:
            bt -= 1
            continue
        break

    nB = pl.cdiv(B, bt)   # trailing partial batch block is masked on store
    nI = pl.cdiv(N, tm)
    nK = pl.cdiv(N, tk)

    ws = working_set(bt, tm, tk)
    vmem_limit = int(min(max(ws + (4 << 20), 32 << 20), vmem_cap))

    # ---- block specs (lane-dense full-extent channel dims; no pad + slice).
    adj_spec = pl.BlockSpec((bt, tm, tk), lambda b, i, k: (b, i, k))
    out_spec = pl.BlockSpec((bt, tm, Cout), lambda b, i, k: (b, i, 0))
    b_spec = pl.BlockSpec((1, Cout), lambda b, i, k: (0, 0))
    if hoist:
        h_spec = pl.BlockSpec((bt, tk, Cout), lambda b, i, k: (b, k, 0))
        in_specs = [adj_spec, h_spec, b_spec]
        operands = (adj_in, h_in, b_arr)
        kernel = _gcn_kernel_hoisted
        flops = 2 * B * N * N * Cout
        stream_bytes = (adj_in.size * in_isz + nI * h_in.size * in_isz
                        + B * N * Cout * out_isz + Cout * out_isz)
    else:
        x_spec = pl.BlockSpec((bt, tk, Cin), lambda b, i, k: (b, k, 0))
        w_spec = pl.BlockSpec((Cin, Cout), lambda b, i, k: (0, 0))
        in_specs = [adj_spec, x_spec, w_spec, b_spec]
        operands = (adj_in, x_in, w_in, b_arr)
        kernel = _gcn_kernel_adj_first
        flops = 2 * B * N * N * Cin + 2 * B * N * Cin * Cout
        stream_bytes = (adj_in.size * in_isz + nI * x_in.size * in_isz
                        + Cin * Cout * in_isz + B * N * Cout * out_isz
                        + Cout * out_isz)

    cost = pl.CostEstimate(flops=int(flops), transcendentals=0,
                           bytes_accessed=int(stream_bytes))

    out = pl.pallas_call(
        kernel,
        out_shape=jax.ShapeDtypeStruct((B, N, Cout), out_dtype),
        grid_spec=pltpu.PrefetchScalarGridSpec(
            num_scalar_prefetch=0,
            grid=(nB, nI, nK),
            in_specs=in_specs,
            out_specs=out_spec,
            scratch_shapes=[pltpu.VMEM((bt, tm, acc_w), jnp.float32)]),
        compiler_params=pltpu.CompilerParams(
            dimension_semantics=("parallel", "parallel", "arbitrary"),
            vmem_limit_bytes=vmem_limit),
        cost_estimate=cost,
        interpret=interpret,
    )(*operands)
    return out


def init_weight(key, in_channels, out_channels):
    # nn.init.xavier_normal_: std = sqrt(2 / (fan_in + fan_out))
    std = (2.0 / (in_channels + out_channels)) ** 0.5
    return std * jax.random.normal(key, (in_channels, out_channels), jnp.float32)


if __name__ == "__main__":
    key = jax.random.PRNGKey(0)
    ks = jax.random.split(key, 10)

    # ---- 1) module-default config (bias=False); exact f32 path, adj-first kernel.
    B, N, Cin, Cout = 2, 16, 32, 32
    x = jax.random.normal(ks[0], (B, N, Cin), jnp.float32)
    adj = jax.nn.softmax(jax.random.normal(ks[1], (B, N, N), jnp.float32), axis=-1)
    w = init_weight(ks[2], Cin, Cout)
    ref = jnp.matmul(jnp.matmul(adj, x), w)

    out = jax.block_until_ready(graph_convolution(x, adj, w, matmul_dtype=None))
    assert out.shape == (B, N, Cout)
    assert jnp.allclose(out, ref, atol=1e-4, rtol=1e-4)

    # ---- 2) default path (bf16 MXU inputs, f32 accumulation) + bias.
    bias = 0.1 * jax.random.normal(ks[3], (Cout,), jnp.float32)
    out_b = jax.block_until_ready(graph_convolution(x, adj, w, bias=bias))
    assert out_b.shape == (B, N, Cout)
    assert jnp.allclose(out_b, ref + bias, atol=5e-2, rtol=5e-2)

    # ---- 3) narrow-output (hoisted x@W) path with row + contraction (K) tiling.
    B2, N2, Ci2, Co2 = 2, 256, 192, 64
    x2 = jax.random.normal(ks[4], (B2, N2, Ci2), jnp.float32)
    adj2 = jax.nn.softmax(jax.random.normal(ks[5], (B2, N2, N2), jnp.float32), axis=-1)
    w2 = init_weight(ks[6], Ci2, Co2)
    ref2 = jnp.matmul(jnp.matmul(adj2, x2), w2)
    out2 = jax.block_until_ready(graph_convolution(
        x2, adj2, w2, block_m=128, block_k=128, matmul_dtype=None))
    assert out2.shape == (B2, N2, Co2)
    assert jnp.allclose(out2, ref2, atol=1e-3, rtol=1e-3)

    # ---- 4) odd batch (cdiv packing, masked trailing block), default bf16 path.
    B3, N3, Ci3, Co3 = 3, 16, 32, 8
    x3 = jax.random.normal(ks[7], (B3, N3, Ci3), jnp.float32)
    adj3 = jax.nn.softmax(jax.random.normal(ks[8], (B3, N3, N3), jnp.float32), axis=-1)
    w3 = init_weight(ks[9], Ci3, Co3)
    ref3 = jnp.matmul(jnp.matmul(adj3, x3), w3)
    out3 = jax.block_until_ready(graph_convolution(x3, adj3, w3, batch_block=2))
    assert out3.shape == (B3, N3, Co3)
    assert jnp.allclose(out3, ref3, atol=5e-2, rtol=5e-2)

    print("KERNEL_OK")
</pallas_src>

<mosaic_0001>
module attributes {stable_mosaic.version = 11 : i64} {
  func.func @_gcn_kernel_adj_first(%arg0: i32, %arg1: i32, %arg2: i32, %arg3: memref<2x16x16xf32, #tpu.memory_space<vmem>>, %arg4: memref<2x16x32xf32, #tpu.memory_space<vmem>>, %arg5: memref<32x32xf32, #tpu.memory_space<vmem>>, %arg6: memref<1x32xf32, #tpu.memory_space<vmem>>, %arg7: memref<2x16x32xf32, #tpu.memory_space<vmem>>, %arg8: memref<2x16x32xf32, #tpu.memory_space<vmem>>) attributes {dimension_semantics = [#tpu.dimension_semantics<parallel>, #tpu.dimension_semantics<parallel>, #tpu.dimension_semantics<arbitrary>], iteration_bounds = array<i64: 1, 1, 1>, scalar_prefetch = 0 : i64, scratch_operands = 1 : i64, tpu.core_type = #tpu.core_type<tc>, window_params = [{transform_indices = @transform_0, window_bounds = array<i64: 2, 16, 16>}, {transform_indices = @transform_1, window_bounds = array<i64: 2, 16, 32>}, {pipeline_mode = #tpu.pipeline_mode<synchronous>, transform_indices = @transform_2, window_bounds = array<i64: 32, 32>}, {pipeline_mode = #tpu.pipeline_mode<synchronous>, transform_indices = @transform_3, window_bounds = array<i64: 1, 32>}, {transform_indices = @transform_4, window_bounds = array<i64: 2, 16, 32>}]} {
    %c0_i32 = arith.constant 0 : i32
    %0 = arith.cmpi eq, %arg2, %c0_i32 : i32
    %1 = arith.extui %0 : i1 to i32
    %c0_i32_0 = arith.constant 0 : i32
    %2 = arith.cmpi ne, %1, %c0_i32_0 : i32
    scf.if %2 {
      %cst_14 = arith.constant 0.000000e+00 : f32
      %12 = vector.broadcast %cst_14 : f32 to vector<2x16x32xf32>
      %c0_15 = arith.constant 0 : index
      %c0_16 = arith.constant 0 : index
      %c0_17 = arith.constant 0 : index
      %13 = vector.load %arg8[%c0_15, %c0_16, %c0_17] : memref<2x16x32xf32, #tpu.memory_space<vmem>>, vector<2x16x32xf32>
      tpu.vector_store %arg8[%c0_15, %c0_16, %c0_17], %12 {strides = array<i32>} : memref<2x16x32xf32, #tpu.memory_space<vmem>>, vector<2x16x32xf32>,
    } else {
    }
    %c0 = arith.constant 0 : index
    %c0_1 = arith.constant 0 : index
    %c0_2 = arith.constant 0 : index
    %3 = vector.load %arg8[%c0, %c0_1, %c0_2] : memref<2x16x32xf32, #tpu.memory_space<vmem>>, vector<2x16x32xf32>
    %c0_3 = arith.constant 0 : index
    %c0_4 = arith.constant 0 : index
    %c0_5 = arith.constant 0 : index
    %4 = vector.load %arg3[%c0_3, %c0_4, %c0_5] : memref<2x16x16xf32, #tpu.memory_space<vmem>>, vector<2x16x16xf32>
    %c0_6 = arith.constant 0 : index
    %c0_7 = arith.constant 0 : index
    %c0_8 = arith.constant 0 : index
    %5 = vector.load %arg4[%c0_6, %c0_7, %c0_8] : memref<2x16x32xf32, #tpu.memory_space<vmem>>, vector<2x16x32xf32>
    "tpu.trace_start"() <{level = 10 : i32, message = "bmn,bnc->bmc"}> : () -> ()
    %cst = arith.constant dense<0.000000e+00> : vector<2x16x32xf32>
    %6 = tpu.matmul %4, %5, %cst {dimension_numbers = #tpu.dot_dimension_numbers<[2], [1], [1], [2], [0, 0, 0, 1, 1, 2], [0], [0]>} : vector<2x16x16xf32>, vector<2x16x32xf32>, vector<2x16x32xf32> -> vector<2x16x32xf32>
    "tpu.trace_stop"() : () -> ()
    %7 = arith.addf %3, %6 : vector<2x16x32xf32>
    %c0_9 = arith.constant 0 : index
    %c0_10 = arith.constant 0 : index
    %c0_11 = arith.constant 0 : index
    %8 = vector.load %arg8[%c0_9, %c0_10, %c0_11] : memref<2x16x32xf32, #tpu.memory_space<vmem>>, vector<2x16x32xf32>
    tpu.vector_store %arg8[%c0_9, %c0_10, %c0_11], %7 {strides = array<i32>} : memref<2x16x32xf32, #tpu.memory_space<vmem>>, vector<2x16x32xf32>,
    %c0_i32_12 = arith.constant 0 : i32
    %9 = arith.cmpi eq, %arg2, %c0_i32_12 : i32
    %10 = arith.extui %9 : i1 to i32
    %c0_i32_13 = arith.constant 0 : i32
    %11 = arith.cmpi ne, %10, %c0_i32_13 : i32
    scf.if %11 {
      %c0_14 = arith.constant 0 : index
      %c0_15 = arith.constant 0 : index
      %c0_16 = arith.constant 0 : index
      %12 = vector.load %arg8[%c0_14, %c0_15, %c0_16] : memref<2x16x32xf32, #tpu.memory_space<vmem>>, vector<2x16x32xf32>
      %13 = vector.shape_cast %12 : vector<2x16x32xf32> to vector<32x32xf32>
      %c0_17 = arith.constant 0 : index
      %c0_18 = arith.constant 0 : index
      %14 = vector.load %arg5[%c0_17, %c0_18] : memref<32x32xf32, #tpu.memory_space<vmem>>, vector<32x32xf32>
      %cst_19 = arith.constant dense<0.000000e+00> : vector<32x32xf32>
      %15 = tpu.matmul %13, %14, %cst_19 {dimension_numbers = #tpu.dot_dimension_numbers<[1], [0], [0], [1], [0, 0, 1, 1], [], []>} : vector<32x32xf32>, vector<32x32xf32>, vector<32x32xf32> -> vector<32x32xf32>
      %16 = vector.shape_cast %15 : vector<32x32xf32> to vector<2x16x32xf32>
      %c0_20 = arith.constant 0 : index
      %c0_21 = arith.constant 0 : index
      %17 = vector.load %arg6[%c0_20, %c0_21] : memref<1x32xf32, #tpu.memory_space<vmem>>, vector<1x32xf32>
      %18 = vector.shape_cast %17 : vector<1x32xf32> to vector<1x1x32xf32>
      %19 = vector.broadcast %18 : vector<1x1x32xf32> to vector<2x16x32xf32>
      %20 = arith.addf %16, %19 : vector<2x16x32xf32>
      %c0_22 = arith.constant 0 : index
      %c0_23 = arith.constant 0 : index
      %c0_24 = arith.constant 0 : index
      %21 = vector.load %arg7[%c0_22, %c0_23, %c0_24] : memref<2x16x32xf32, #tpu.memory_space<vmem>>, vector<2x16x32xf32>
      tpu.vector_store %arg7[%c0_22, %c0_23, %c0_24], %20 {strides = array<i32>} : memref<2x16x32xf32, #tpu.memory_space<vmem>>, vector<2x16x32xf32>,
    } else {
    }
    return
  }
  func.func @transform_0(%arg0: i32, %arg1: i32, %arg2: i32) -> (i32, i32, i32) {
    %c0_i32 = arith.constant 0 : i32
    return %arg0, %arg1, %arg2 : i32, i32, i32
  }
  func.func @transform_1(%arg0: i32, %arg1: i32, %arg2: i32) -> (i32, i32, i32) {
    %c0_i32 = arith.constant 0 : i32
    %c0_i32_0 = arith.constant 0 : i32
    return %arg0, %arg2, %c0_i32 : i32, i32, i32
  }
  func.func @transform_2(%arg0: i32, %arg1: i32, %arg2: i32) -> (i32, i32) {
    %c0_i32 = arith.constant 0 : i32
    %c0_i32_0 = arith.constant 0 : i32
    %c0_i32_1 = arith.constant 0 : i32
    return %c0_i32, %c0_i32_0 : i32, i32
  }
  func.func @transform_3(%arg0: i32, %arg1: i32, %arg2: i32) -> (i32, i32) {
    %c0_i32 = arith.constant 0 : i32
    %c0_i32_0 = arith.constant 0 : i32
    %c0_i32_1 = arith.constant 0 : i32
    return %c0_i32, %c0_i32_0 : i32, i32
  }
  func.func @transform_4(%arg0: i32, %arg1: i32, %arg2: i32) -> (i32, i32, i32) {
    %c0_i32 = arith.constant 0 : i32
    %c0_i32_0 = arith.constant 0 : i32
    return %arg0, %arg1, %c0_i32 : i32, i32, i32
  }
}

</mosaic_0001>

<bundles_post_ra>
// kernel: tpu_custom_call.1
= control target key start
LH: loop header
LB: loop body
LE: loop exit
PB: predicated region body
PF: predicated region fallthrough
CT: control target
= control target key end

     0   :  { %9 = vsyncpa [#allocation4], 0  ;;  %s435_s0 = inlined_call_operand.hbm [shape: f32[2,16,16], index: 0, kind: input, shape index: {}]   ;;  %s436_s1 = inlined_call_operand.hbm [shape: f32[2,16,32], index: 1, kind: input, shape index: {}]   ;;  %s437_s2 = inlined_call_operand.hbm [shape: f32[32,32], index: 2, kind: input, shape index: {}]   ;;  %s438_s3 = inlined_call_operand.vmem [shape: f32[1,32], index: 3, kind: input, shape index: {}]   ;;  %s439_s4 = inlined_call_operand.hbm [shape: f32[2,16,32], index: 4, kind: output, shape index: {}]  }
   0x1   :  { %10 = vsyncpa [#allocation7], 0 }
   0x2   :  { %11 = vsyncpa [#allocation5], 0  ;;  %s29_s17 = sshll.u32 %s436_s1, 4  ;;  %s360_s18 = smov [#allocation6]   ;;  %s30_s17 = int_to_ptr.hbm [resolvable:$true] %s29_s17 }
   0x3   :  { %s31_s19 = sshll.u32 %s360_s18, 4  ;;  %s16_s22 = sshll.u32 %s435_s0, 4  ;;  %s32_s19 = int_to_ptr.vmem [resolvable:$true] %s31_s19  ;;  %s17_s22 = int_to_ptr.hbm [resolvable:$true] %s16_s22 }
   0x4   :  { %s361_s23 = smov 128   ;;  %s362_s24 = smov 8  }
   0x5   :  { %37 = dma.hbm_to_vmem [thread:$0]  %s30_s17, 512, %s32_s19, [#allocation7], %s361_s23, %s361_s23, %s362_s24  }
   0x6   :  { %s363_s25 = smov [#allocation3]   ;;  %s42_s1 = sshll.u32 %s437_s2, 4  ;;  %s43_s1 = int_to_ptr.hbm [resolvable:$true] %s42_s1 }
   0x7   :  { %s18_s26 = sshll.u32 %s363_s25, 4  ;;  %s364_s0 = smov [#allocation8]   ;;  %s19_s26 = int_to_ptr.vmem [resolvable:$true] %s18_s26 }
   0x8   :  { %24 = dma.hbm_to_vmem [thread:$0]  %s17_s22, 512, %s19_s26, [#allocation4], %s361_s23, %s361_s23, %s362_s24  }
   0x9   :  { %s44_s29 = sshll.u32 %s364_s0, 4  ;;  %s45_s29 = int_to_ptr.vmem [resolvable:$true] %s44_s29 }
   0xa   :  { %50 = dma.hbm_to_vmem [thread:$0]  %s43_s1, 512, %s45_s29, [#allocation7], %s361_s23, %s361_s23, %s362_s24  }
   0xb   :  { %354 = dma.done.wait [#allocation4], 512  }
   0xc   :  { %355 = vsyncadd [#allocation4], 4294966784 }
   0xd   :  { %356 = dma.done.wait [#allocation7], 1024  }
   0xe   :  { %357 = vsyncadd [#allocation7], 4294966272  ;;  %vm69_vm0 = vcmask 261120   ;;  %v365_v0 = vmov 0.0   ;;  %v83_v1 = vld [vmem:[#allocation6 + $0x8] sm:$0xff]  ;;  %v85_v2 = vld [vmem:[#allocation6 + $0x18] sm:$0xff] }
   0xf   :  { %70 = vst.msk [vmem:[#allocation2] sm:$0xff] %vm69_vm0, %v365_v0  ;;  %v82_v3 = vld [vmem:[#allocation6] sm:$0xff]  ;;  %107 = vmatpush.msra.mxu0 %v83_v1  ;;  %136 = vmatpush.msra.mxu1 %v85_v2  ;;  %v84_v4 = vld [vmem:[#allocation6 + $0x10] sm:$0xff]  ;;  %vm86_vm1 = vcmask 130048   ;;  %v79_v7 = vld [vmem:[#allocation3 + $0x8] sm:$0xff]  ;;  %s366_s5 = smov [#allocation9]  }
  0x10   :  { %71 = vst.msk [vmem:[#allocation2 + $0x8] sm:$0xff] %vm69_vm0, %v365_v0  ;;  %v78_v5 = vld [vmem:[#allocation3] sm:$0xff]  ;;  %v80_v6 = vld [vmem:[#allocation3 + $0x10] sm:$0xff]  ;;  %v81_v8 = vld [vmem:[#allocation3 + $0x18] sm:$0xff]  ;;  %s222_s6 = sshll.u32 %s366_s5, 4  ;;  %s224_s9 = sshll.u32 %s439_s4, 4  ;;  %s223_s6 = int_to_ptr.vmem [resolvable:$true] %s222_s6  ;;  %s225_s9 = int_to_ptr.hbm [resolvable:$true] %s224_s9 }
  0x11   :  { %72 = vst.msk [vmem:[#allocation2 + $0x10] sm:$0xff] %vm69_vm0, %v365_v0  ;;  %108 = vmatpush.msra.mxu0 %v82_v3  ;;  %137 = vmatpush.msra.mxu1 %v84_v4  ;;  %v164_v9 = vld [vmem:[#allocation8 + $0x18] sm:$0xff]  ;;  %v163_v10 = vld [vmem:[#allocation8 + $0x10] sm:$0xff]  ;;  %v162_v11 = vld [vmem:[#allocation8 + $0x8] sm:$0xff] }
  0x12   :  { %73 = vst.msk [vmem:[#allocation2 + $0x18] sm:$0xff] %vm69_vm0, %v365_v0  ;;  %238 = vmatmul.msk.f32.vlgmr.msra.gmra.mxu0 %vm86_vm1, %v78_v5  ;;  %240 = vmatmul.msk.f32.vlgmr.msra.gmra.mxu1 %vm86_vm1, %v80_v6  ;;  %v161_v12 = vld [vmem:[#allocation8] sm:$0xff] }
  0x13   :  { %189 = vmatpush.msra.mxu2 %v164_v9  ;;  %246 = vmatpush.msra.mxu3 %v164_v9  ;;  %v257_v29 = vld [vmem:[%s438_s3] ss:$0 sm:$0xff] }
  0x15   :  { %190 = vmatpush.msra.mxu2 %v163_v10  ;;  %247 = vmatpush.msra.mxu3 %v163_v10 }
  0x16   :  { %v74_v13 = vld [vmem:[#allocation2] sm:$0xff] }
  0x17   :  { %191 = vmatpush.msra.mxu2 %v162_v11  ;;  %248 = vmatpush.msra.mxu3 %v162_v11  ;;  %v75_v19 = vld [vmem:[#allocation2 + $0x8] sm:$0xff] }
  0x18   :  { %v76_v14 = vld [vmem:[#allocation2 + $0x10] sm:$0xff] }
  0x19   :  { %192 = vmatpush.msra.mxu2 %v161_v12  ;;  %249 = vmatpush.msra.mxu3 %v161_v12  ;;  %v77_v20 = vld [vmem:[#allocation2 + $0x18] sm:$0xff] }
  0x1a   :  { %239 = vmatmul.msk.f32.gmra.mxu0 %vm86_vm1, %v79_v7  ;;  %241 = vmatmul.msk.f32.gmra.mxu1 %vm86_vm1, %v81_v8 }
  0x8f   :  { %v110_v15 = vpop.f32.mrf.mxu0  ;;  %v139_v16 = vpop.f32.mrf.mxu1 }
  0x90   :  { %v145_v17 = vadd.f32 %v110_v15, %v74_v13  ;;  %v147_v18 = vadd.f32 %v139_v16, %v76_v14 }
  0x92   :  { %150 = vst.msk [vmem:[#allocation2] sm:$0xff] %vm69_vm0, %v145_v17 }
  0x93   :  { %152 = vst.msk [vmem:[#allocation2 + $0x10] sm:$0xff] %vm69_vm0, %v147_v18 }
  0x97   :  { %v113_v21 = vpop.f32.mrf.mxu0  ;;  %v142_v22 = vpop.f32.mrf.mxu1 }
  0x98   :  { %v146_v23 = vadd.f32 %v113_v21, %v75_v19  ;;  %v148_v24 = vadd.f32 %v142_v22, %v77_v20 }
  0x99   :  { %v157_v25 = vld [vmem:[#allocation2] sm:$0xff] }
  0x9a   :  { %151 = vst.msk [vmem:[#allocation2 + $0x8] sm:$0xff] %vm69_vm0, %v146_v23  ;;  %242 = vmatmul.msk.f32.vlgmr.msra.gmra.mxu2 %vm69_vm0, %v157_v25  ;;  %v159_v26 = vld [vmem:[#allocation2 + $0x10] sm:$0xff] }
  0x9b   :  { %153 = vst.msk [vmem:[#allocation2 + $0x18] sm:$0xff] %vm69_vm0, %v148_v24  ;;  %244 = vmatmul.msk.f32.vlgmr.msra.gmra.mxu3 %vm69_vm0, %v159_v26 }
  0xa1   :  { %v158_v27 = vld [vmem:[#allocation2 + $0x8] sm:$0xff] }
  0xa2   :  { %243 = vmatmul.msk.f32.gmra.mxu2 %vm69_vm0, %v158_v27  ;;  %v160_v28 = vld [vmem:[#allocation2 + $0x18] sm:$0xff] }
  0xa3   :  { %245 = vmatmul.msk.f32.gmra.mxu3 %vm69_vm0, %v160_v28 }
 0x11d   :  { %v194_v30 = vpop.f32.mrf.mxu2 }
 0x11e   :  { %v210_v31 = vadd.f32 %v257_v29, %v194_v30  ;;  %v200_v32 = vpop.f32.mrf.mxu3 }
 0x11f   :  { %v212_v33 = vadd.f32 %v257_v29, %v200_v32 }
 0x120   :  { %214 = vst.msk [vmem:[#allocation9] sm:$0xff] %vm69_vm0, %v210_v31 }
 0x121   :  { %216 = vst.msk [vmem:[#allocation9 + $0x10] sm:$0xff] %vm69_vm0, %v212_v33 }
 0x125   :  { %v197_v34 = vpop.f32.mrf.mxu2 }
 0x126   :  { %v211_v35 = vadd.f32 %v257_v29, %v197_v34  ;;  %v203_v36 = vpop.f32.mrf.mxu3 }
 0x127   :  { %v213_v37 = vadd.f32 %v257_v29, %v203_v36 }
 0x128   :  { %215 = vst.msk [vmem:[#allocation9 + $0x8] sm:$0xff] %vm69_vm0, %v211_v35 }
 0x129   :  { %217 = vst.msk [vmem:[#allocation9 + $0x18] sm:$0xff] %vm69_vm0, %v213_v37 }
 0x12a   :  { %230 = dma.vmem_to_hbm [thread:$0]  %s223_s6, 512, %s225_s9, [#allocation5], %s361_s23, %s361_s23, %s362_s24  }
 0x12b   :  { %358 = dma.done.wait [#allocation5], 512  }
 0x12c   :  { %359 = vsyncadd [#allocation5], 4294966784 }
 0x12d   :  { %235 = vsyncpa [#allocation4], 1 }
 0x12e   :  { %236 = vsyncpa [#allocation7], 1 }
 0x12f   :  { %237 = vsyncpa [#allocation5], 1 }

</bundles_post_ra>
